<compile_context>
chip_gen: v7x
topology: tpu7x:2x2x1
jax: 0.10.0
libtpu: 0.0.40
codegen_flags: <defaults>
</compile_context>

<pallas_src>
from typing import NamedTuple

import jax
import jax.numpy as jnp
from jax.experimental import pallas as pl
from jax.experimental.pallas import tpu as pltpu


def _round_up(x, m):
    return (x + m - 1) // m * m


def _pick_tile(dim_padded, target, unit):
    """Largest multiple of `unit` that is <= target and divides `dim_padded`
    (dim_padded is itself a multiple of `unit`)."""
    if dim_padded <= target:
        return dim_padded
    cand = (target // unit) * unit
    while cand > unit:
        if dim_padded % cand == 0:
            return cand
        cand -= unit
    return unit


class ProjectionParams(NamedTuple):
    w_kn: jax.Array   # [Kp, Np] — transposed, zero-padded, compute dtype
    b_n: jax.Array    # [1, Np]  — zero-padded, float32
    in_dim: int       # original K (input_dim)
    out_dim: int      # original N (embedding_dim)


def prepare_projection_params(weight, bias, *, compute_dtype=jnp.bfloat16):
    """One-time (init-time) preparation of the torch-layout parameters.

    weight: [embedding_dim, input_dim] (torch nn.Linear layout), bias: [N].
    Transposes to [K, N], casts to the MXU compute dtype and zero-pads K/N to
    lane-dense multiples of 128.  Zero padding is numerically inert: padded K
    rows contribute 0 to the dot, padded N cols are sliced off after the call.
    """
    N, K = weight.shape
    Kp = _round_up(K, 128)
    Np = _round_up(N, 128)

    w_kn = weight.T                     # one-time transpose, hoisted out of calls
    if compute_dtype is not None:
        w_kn = w_kn.astype(compute_dtype)
    if (Kp, Np) != (K, N):
        w_kn = jnp.pad(w_kn, ((0, Kp - K), (0, Np - N)))

    b = bias.astype(jnp.float32)
    if Np != N:
        b = jnp.pad(b, (0, Np - N))
    return ProjectionParams(w_kn, b.reshape(1, Np), K, N)


def _proj_relu_kernel(x_ref, w_ref, b_ref, o_ref, acc_ref):
    # x_ref: [tm, tk], w_ref: [tk, tn], b_ref: [1, tn] (f32)
    # o_ref: [tm, tn], acc_ref: [tm, tn] f32 accumulator scratch
    k = pl.program_id(2)

    prod = jnp.dot(x_ref[...], w_ref[...], preferred_element_type=jnp.float32)

    @pl.when(k == 0)
    def _():
        acc_ref[...] = prod            # direct assign: no zero-fill + RMW

    @pl.when(k > 0)
    def _():
        acc_ref[...] += prod

    @pl.when(k == pl.num_programs(2) - 1)
    def _():
        out = acc_ref[...] + b_ref[...]
        o_ref[...] = jnp.maximum(out, 0.0).astype(o_ref.dtype)


def multimodal_projection(x, params: ProjectionParams, *, tm=512, tn=1024,
                          tk=1024, out_dtype=None):
    """relu(x @ W^T + b) with W/b pre-prepared by prepare_projection_params.

    x: [..., input_dim].  Returns [..., embedding_dim] in `out_dtype`
    (default: x.dtype).
    """
    K, N = params.in_dim, params.out_dim
    Kp, Np = params.w_kn.shape
    assert x.shape[-1] == K, "last dim of x must equal input_dim"

    out_dtype = x.dtype if out_dtype is None else out_dtype
    lead = x.shape[:-1]

    x2 = x.reshape(-1, K)
    M = x2.shape[0]

    compute_dtype = params.w_kn.dtype
    if x2.dtype != compute_dtype:
        x2 = x2.astype(compute_dtype)

    c_item = jnp.dtype(compute_dtype).itemsize
    sub = {4: 8, 2: 16, 1: 32}.get(c_item, 8)      # sublane multiple per dtype

    # Tile sizes: lane/sublane aligned, clamped to the (padded) problem dims,
    # and chosen so they divide the padded dims exactly (lane-dense, unmasked
    # stores; no M % tm assertion).
    tm_e = min(_round_up(tm, sub), _round_up(M, sub))
    tn_e = _pick_tile(Np, _round_up(tn, 128), 128)  # full N resident if modest
    tk_e = _pick_tile(Kp, _round_up(tk, 128), 128)

    Mp = _round_up(M, tm_e)

    # Only the activations may need per-call padding (M to the row tile, K to
    # the pre-padded Kp).  Padded K contributes 0 (weight K rows are zero);
    # padded M rows are sliced off below.
    if (Mp, Kp) != (M, K):
        x2 = jnp.pad(x2, ((0, Mp - M), (0, Kp - K)))

    grid = (Mp // tm_e, Np // tn_e, Kp // tk_e)

    # VMEM budget: double-buffered x/w/bias/out tiles + f32 accumulator.
    o_item = jnp.dtype(out_dtype).itemsize
    est = (2 * (tm_e * tk_e * c_item            # x tile
                + tk_e * tn_e * c_item          # weight tile
                + tn_e * 4                      # bias tile
                + tm_e * tn_e * o_item)         # out tile
           + tm_e * tn_e * 4)                   # f32 accumulator
    vmem_limit = min(max(32 * 1024 * 1024, int(est * 1.25)), 64 * 1024 * 1024)

    cost = pl.CostEstimate(
        flops=2 * Mp * Kp * Np,
        transcendentals=0,
        bytes_accessed=int(x2.size * c_item + params.w_kn.size * c_item
                           + params.b_n.size * 4 + Mp * Np * o_item),
    )

    out = pl.pallas_call(
        _proj_relu_kernel,
        out_shape=jax.ShapeDtypeStruct((Mp, Np), out_dtype),
        grid_spec=pltpu.PrefetchScalarGridSpec(
            num_scalar_prefetch=0,
            grid=grid,
            in_specs=[
                pl.BlockSpec((tm_e, tk_e), lambda i, j, k: (i, k)),   # x
                pl.BlockSpec((tk_e, tn_e), lambda i, j, k: (k, j)),   # W^T [K,N]
                pl.BlockSpec((1, tn_e), lambda i, j, k: (0, j)),      # bias
            ],
            out_specs=pl.BlockSpec((tm_e, tn_e), lambda i, j, k: (i, j)),
            scratch_shapes=[pltpu.VMEM((tm_e, tn_e), jnp.float32)],
        ),
        compiler_params=pltpu.CompilerParams(
            dimension_semantics=("parallel", "parallel", "arbitrary"),
            vmem_limit_bytes=vmem_limit),
        cost_estimate=cost,
    )(x2, params.w_kn, params.b_n)

    if (Mp, Np) != (M, N):
        out = out[:M, :N]
    return out.reshape(*lead, N)


def _reference(x, weight, bias):
    y = jnp.einsum("...k,nk->...n", x, weight,
                   precision=jax.lax.Precision.HIGHEST) + bias
    return jnp.maximum(y, 0.0)


if __name__ == "__main__":
    key = jax.random.PRNGKey(0)
    k_x, k_w, k_b, k_x2, k_w2, k_b2 = jax.random.split(key, 6)

    # --- Demo at module-like shapes (default bf16 compute path) -------------
    batch, seq, input_dim, embedding_dim = 2, 8, 32, 64

    x = jax.random.normal(k_x, (batch, seq, input_dim), dtype=jnp.float32)
    bound = 1.0 / (input_dim ** 0.5)
    weight = jax.random.uniform(k_w, (embedding_dim, input_dim),
                                minval=-bound, maxval=bound, dtype=jnp.float32)
    bias = jax.random.uniform(k_b, (embedding_dim,),
                              minval=-bound, maxval=bound, dtype=jnp.float32)

    params = prepare_projection_params(weight, bias)          # bf16 compute
    out = multimodal_projection(x, params)
    out = jax.block_until_ready(out)

    ref = _reference(x, weight, bias)
    assert out.shape == (batch, seq, embedding_dim)
    # bf16 MXU inputs => loosened tolerance (f32 accumulation + f32 epilogue).
    assert jnp.allclose(out, ref, atol=5e-2, rtol=5e-2)

    # --- Multi-tile check: K accumulation across grid steps + M/N/K tails ---
    M2, K2, N2 = 300, 200, 192
    x2 = jax.random.normal(k_x2, (M2, K2), dtype=jnp.float32)
    bound2 = 1.0 / (K2 ** 0.5)
    w2 = jax.random.uniform(k_w2, (N2, K2), minval=-bound2, maxval=bound2,
                            dtype=jnp.float32)
    b2 = jax.random.uniform(k_b2, (N2,), minval=-bound2, maxval=bound2,
                            dtype=jnp.float32)

    params2 = prepare_projection_params(w2, b2, compute_dtype=jnp.float32)
    out2 = multimodal_projection(x2, params2, tm=128, tn=128, tk=128)
    out2 = jax.block_until_ready(out2)
    ref2 = _reference(x2, w2, b2)
    assert out2.shape == (M2, N2)
    assert jnp.allclose(out2, ref2, atol=2e-2, rtol=2e-2)

    print("KERNEL_OK")
</pallas_src>

<mosaic_0001>
module attributes {stable_mosaic.version = 11 : i64} {
  func.func @_proj_relu_kernel(%arg0: i32, %arg1: i32, %arg2: i32, %arg3: memref<16x128xbf16, #tpu.memory_space<vmem>>, %arg4: memref<128x128xbf16, #tpu.memory_space<vmem>>, %arg5: memref<1x128xf32, #tpu.memory_space<vmem>>, %arg6: memref<16x128xf32, #tpu.memory_space<vmem>>, %arg7: memref<16x128xf32, #tpu.memory_space<vmem>>) attributes {dimension_semantics = [#tpu.dimension_semantics<parallel>, #tpu.dimension_semantics<parallel>, #tpu.dimension_semantics<arbitrary>], iteration_bounds = array<i64: 1, 1, 1>, scalar_prefetch = 0 : i64, scratch_operands = 1 : i64, tpu.core_type = #tpu.core_type<tc>, window_params = [{transform_indices = @transform_0, window_bounds = array<i64: 16, 128>}, {transform_indices = @transform_1, window_bounds = array<i64: 128, 128>}, {transform_indices = @transform_2, window_bounds = array<i64: 1, 128>}, {transform_indices = @transform_3, window_bounds = array<i64: 16, 128>}]} {
    %c0 = arith.constant 0 : index
    %c0_0 = arith.constant 0 : index
    %0 = vector.load %arg3[%c0, %c0_0] : memref<16x128xbf16, #tpu.memory_space<vmem>>, vector<16x128xbf16>
    %c0_1 = arith.constant 0 : index
    %c0_2 = arith.constant 0 : index
    %1 = vector.load %arg4[%c0_1, %c0_2] : memref<128x128xbf16, #tpu.memory_space<vmem>>, vector<128x128xbf16>
    %cst = arith.constant dense<0.000000e+00> : vector<16x128xf32>
    %2 = tpu.matmul %0, %1, %cst {dimension_numbers = #tpu.dot_dimension_numbers<[1], [0], [0], [1], [0, 0, 1, 1], [], []>} : vector<16x128xbf16>, vector<128x128xbf16>, vector<16x128xf32> -> vector<16x128xf32>
    %c0_i32 = arith.constant 0 : i32
    %3 = arith.cmpi eq, %arg2, %c0_i32 : i32
    %4 = arith.extui %3 : i1 to i32
    %c0_i32_3 = arith.constant 0 : i32
    %5 = arith.cmpi ne, %4, %c0_i32_3 : i32
    scf.if %5 {
      %c0_8 = arith.constant 0 : index
      %c0_9 = arith.constant 0 : index
      %12 = vector.load %arg7[%c0_8, %c0_9] : memref<16x128xf32, #tpu.memory_space<vmem>>, vector<16x128xf32>
      tpu.vector_store %arg7[%c0_8, %c0_9], %2 {strides = array<i32>} : memref<16x128xf32, #tpu.memory_space<vmem>>, vector<16x128xf32>,
    } else {
    }
    %c0_i32_4 = arith.constant 0 : i32
    %6 = arith.cmpi sgt, %arg2, %c0_i32_4 : i32
    %7 = arith.extui %6 : i1 to i32
    %c0_i32_5 = arith.constant 0 : i32
    %8 = arith.cmpi ne, %7, %c0_i32_5 : i32
    scf.if %8 {
      %c0_8 = arith.constant 0 : index
      %c0_9 = arith.constant 0 : index
      %12 = vector.load %arg7[%c0_8, %c0_9] : memref<16x128xf32, #tpu.memory_space<vmem>>, vector<16x128xf32>
      %13 = arith.addf %12, %2 : vector<16x128xf32>
      %c0_10 = arith.constant 0 : index
      %c0_11 = arith.constant 0 : index
      %14 = vector.load %arg7[%c0_10, %c0_11] : memref<16x128xf32, #tpu.memory_space<vmem>>, vector<16x128xf32>
      tpu.vector_store %arg7[%c0_10, %c0_11], %13 {strides = array<i32>} : memref<16x128xf32, #tpu.memory_space<vmem>>, vector<16x128xf32>,
    } else {
    }
    %c0_i32_6 = arith.constant 0 : i32
    %9 = arith.cmpi eq, %arg2, %c0_i32_6 : i32
    %10 = arith.extui %9 : i1 to i32
    %c0_i32_7 = arith.constant 0 : i32
    %11 = arith.cmpi ne, %10, %c0_i32_7 : i32
    scf.if %11 {
      %c0_8 = arith.constant 0 : index
      %c0_9 = arith.constant 0 : index
      %12 = vector.load %arg7[%c0_8, %c0_9] : memref<16x128xf32, #tpu.memory_space<vmem>>, vector<16x128xf32>
      %c0_10 = arith.constant 0 : index
      %c0_11 = arith.constant 0 : index
      %13 = vector.load %arg5[%c0_10, %c0_11] : memref<1x128xf32, #tpu.memory_space<vmem>>, vector<1x128xf32>
      %14 = vector.broadcast %13 : vector<1x128xf32> to vector<16x128xf32>
      %15 = arith.addf %12, %14 : vector<16x128xf32>
      %cst_12 = arith.constant 0.000000e+00 : f32
      %16 = vector.broadcast %cst_12 : f32 to vector<16x128xf32>
      %17 = arith.maximumf %15, %16 : vector<16x128xf32>
      %c0_13 = arith.constant 0 : index
      %c0_14 = arith.constant 0 : index
      %18 = vector.load %arg6[%c0_13, %c0_14] : memref<16x128xf32, #tpu.memory_space<vmem>>, vector<16x128xf32>
      tpu.vector_store %arg6[%c0_13, %c0_14], %17 {strides = array<i32>} : memref<16x128xf32, #tpu.memory_space<vmem>>, vector<16x128xf32>,
    } else {
    }
    return
  }
  func.func @transform_0(%arg0: i32, %arg1: i32, %arg2: i32) -> (i32, i32) {
    %c0_i32 = arith.constant 0 : i32
    return %arg0, %arg2 : i32, i32
  }
  func.func @transform_1(%arg0: i32, %arg1: i32, %arg2: i32) -> (i32, i32) {
    %c0_i32 = arith.constant 0 : i32
    return %arg2, %arg1 : i32, i32
  }
  func.func @transform_2(%arg0: i32, %arg1: i32, %arg2: i32) -> (i32, i32) {
    %c0_i32 = arith.constant 0 : i32
    %c0_i32_0 = arith.constant 0 : i32
    return %c0_i32, %arg1 : i32, i32
  }
  func.func @transform_3(%arg0: i32, %arg1: i32, %arg2: i32) -> (i32, i32) {
    %c0_i32 = arith.constant 0 : i32
    return %arg0, %arg1 : i32, i32
  }
}

</mosaic_0001>

<bundles_post_ra>
// kernel: tpu_custom_call.1
= control target key start
LH: loop header
LB: loop body
LE: loop exit
PB: predicated region body
PF: predicated region fallthrough
CT: control target
= control target key end

     0   :  { %8 = vsyncpa [#allocation4], 0  ;;  %s406_s0 = inlined_call_operand.hbm [shape: bf16[16,128], index: 0, kind: input, shape index: {}]   ;;  %s407_s1 = inlined_call_operand.hbm [shape: bf16[128,128], index: 1, kind: input, shape index: {}]   ;;  %s408_s2 = inlined_call_operand.vmem [shape: f32[1,128], index: 2, kind: input, shape index: {}]   ;;  %s409_s3 = inlined_call_operand.hbm [shape: f32[16,128], index: 3, kind: output, shape index: {}]  }
   0x1   :  { %9 = vsyncpa [#allocation7], 0 }
   0x2   :  { %10 = vsyncpa [#allocation5], 0  ;;  %s338_s12 = smov [#allocation3]   ;;  %s266_s16 = scalar_lea.hbm %s406_s0, 128 }
   0x3   :  { %s16_s13 = sshll.u32 %s338_s12, 4  ;;  %p267_p0 = scmp.ne.s32.totalorder %s406_s0, %s266_s16  ;;  %s17_s13 = int_to_ptr.vmem [resolvable:$true] %s16_s13 }
   0x4   :  { %p270_p1 = scmp.lt.u32.totalorder %s266_s16, %s406_s0 }
   0x6   :  { %p272_p2 = pnand %p270_p1, %p267_p0 }
   0x8   :  { %275 = shalt.err (!%p272_p2)
}
   0x9   :  { %s276_s21 = scalar_lea.vmem %s17_s13, 128  ;;  %p281_p4 = scmp.lt.s32.totalorder %s17_s13, %s17_s13 }
   0xa   :  { %p277_p3 = scmp.ne.s32.totalorder %s17_s13, %s276_s21  ;;  %p282_p5 = scmp.lt.s32.totalorder %s276_s21, %s276_s21 }
   0xc   :  { %p283_p6 = por %p282_p5, %p281_p4 }
   0xe   :  { %p284_p7 = pnand %p283_p6, %p277_p3 }
  0x10   :  { %287 = shalt.err (!%p284_p7)
}
  0x11   :  { %s339_s22 = smov 64   ;;  %s340_s23 = smov 4  }
  0x12   :  { %22 = dma.hbm_to_vmem [thread:$0]  %s406_s0, 128, %s17_s13, [#allocation4], %s339_s22, %s339_s22, %s340_s23  }
  0x13   :  { %s341_s26 = smov [#allocation6]   ;;  %s288_s30 = scalar_lea.hbm %s407_s1, 1024 }
  0x14   :  { %s28_s27 = sshll.u32 %s341_s26, 4  ;;  %p289_p8 = scmp.ne.s32.totalorder %s407_s1, %s288_s30  ;;  %s29_s27 = int_to_ptr.vmem [resolvable:$true] %s28_s27 }
  0x15   :  { %p292_p9 = scmp.lt.u32.totalorder %s288_s30, %s407_s1 }
  0x17   :  { %p294_p10 = pnand %p292_p9, %p289_p8 }
  0x19   :  { %297 = shalt.err (!%p294_p10)
}
  0x1a   :  { %s298_s8 = scalar_lea.vmem %s29_s27, 1024  ;;  %p303_p12 = scmp.lt.s32.totalorder %s29_s27, %s29_s27 }
  0x1b   :  { %p299_p11 = scmp.ne.s32.totalorder %s29_s27, %s298_s8  ;;  %p304_p13 = scmp.lt.s32.totalorder %s298_s8, %s298_s8 }
  0x1d   :  { %p305_p0 = por %p304_p13, %p303_p12 }
  0x1f   :  { %p306_p1 = pnand %p305_p0, %p299_p11 }
  0x21   :  { %309 = shalt.err (!%p306_p1)
}
  0x22   :  { %34 = dma.hbm_to_vmem [thread:$0]  %s407_s1, 1024, %s29_s27, [#allocation7], %s339_s22, %s339_s22, %s340_s23  }
  0x23   :  { %332 = dma.done.wait [#allocation4], 128  }
  0x24   :  { %333 = vsyncadd [#allocation4], 4294967168 }
  0x25   :  { %334 = dma.done.wait [#allocation7], 1024  }
  0x26   :  { %335 = vsyncadd [#allocation7], 4294966272  ;;  %v342_v0 = vmov 0.0   ;;  %vm343_vm0 = vmmov 0   ;;  %v257_v1 = vld [vmem:[#allocation6] sm:$0xff]   ;;  %v258_v2 = vld [vmem:[#allocation6 + $0x8] sm:$0xff]  }
  0x27   :  { %228 = vmatprep.subr.bf16.mxu0 %v342_v0  ;;  %244 = vmatprep.mubr.msk.bf16.mxu0 %vm343_vm0, %v342_v0  ;;  %v259_v3 = vld [vmem:[#allocation6 + $0x10] sm:$0xff]   ;;  %v260_v4 = vld [vmem:[#allocation6 + $0x18] sm:$0xff]   ;;  %v261_v5 = vld [vmem:[#allocation6 + $0x20] sm:$0xff]   ;;  %s344_s11 = smov [#allocation8]  }
  0x28   :  { %229 = vmatpush3.bf16.msra.mxu0 %v257_v1  ;;  %v262_v6 = vld [vmem:[#allocation6 + $0x28] sm:$0xff]   ;;  %v263_v7 = vld [vmem:[#allocation6 + $0x30] sm:$0xff]   ;;  %v264_v8 = vld [vmem:[#allocation6 + $0x38] sm:$0xff]   ;;  %s196_s12 = sshll.u32 %s344_s11, 4  ;;  %s197_s12 = int_to_ptr.vmem [resolvable:$true] %s196_s12 }
  0x29   :  { %230 = vmatprep.subr.bf16.mxu0 %v342_v0  ;;  %v265_v9 = vld [vmem:[#allocation3] sm:$0xff]   ;;  %s310_s13 = scalar_lea.vmem %s197_s12, 256  ;;  %p315_p3 = scmp.lt.s32.totalorder %s197_s12, %s197_s12 }
  0x2a   :  { %v218_v10 = vld [vmem:[%s408_s2] ss:$0 sm:$0xff]  ;;  %p311_p2 = scmp.ne.s32.totalorder %s197_s12, %s310_s13  ;;  %p316_p4 = scmp.lt.s32.totalorder %s310_s13, %s310_s13 }
  0x2c   :  { %231 = vmatpush3.bf16.msra.mxu0 %v258_v2  ;;  %p317_p5 = por %p316_p4, %p315_p3 }
  0x2d   :  { %232 = vmatprep.subr.bf16.mxu0 %v342_v0 }
  0x2e   :  { %p318_p6 = pnand %p317_p5, %p311_p2 }
  0x30   :  { %233 = vmatpush3.bf16.msra.mxu0 %v259_v3 }
  0x31   :  { %234 = vmatprep.subr.bf16.mxu0 %v342_v0 }
  0x34   :  { %235 = vmatpush3.bf16.msra.mxu0 %v260_v4 }
  0x35   :  { %236 = vmatprep.subr.bf16.mxu0 %v342_v0 }
  0x38   :  { %237 = vmatpush3.bf16.msra.mxu0 %v261_v5 }
  0x39   :  { %238 = vmatprep.subr.bf16.mxu0 %v342_v0 }
  0x3c   :  { %239 = vmatpush3.bf16.msra.mxu0 %v262_v6 }
  0x3d   :  { %240 = vmatprep.subr.bf16.mxu0 %v342_v0 }
  0x40   :  { %241 = vmatpush3.bf16.msra.mxu0 %v263_v7 }
  0x41   :  { %242 = vmatprep.subr.bf16.mxu0 %v342_v0 }
  0x44   :  { %243 = vmatpush3.bf16.msra.mxu0 %v264_v8 }
  0x47   :  { %245 = vmatmul.mubr.bf16.vlgmr.msra.gmra.mrb[0].mxu0 %v265_v9 }
 0x11a   :  { %v150_v11 = vpop.f32.mrb[0].mxu0 }
 0x11b   :  { %v185_v12 = vadd.f32 %v218_v10, %v150_v11  ;;  %v246_v13 = vpop.f32.mrb[1].mxu0 }
 0x11c   :  { %v153_v14 = vpop.f32.mrb[2].mxu0 }
 0x11d   :  { %v187_v15 = vmax.f32 %v185_v12, 0.0  ;;  %v186_v16 = vadd.f32 %v218_v10, %v153_v14  ;;  %v247_v17 = vpop.f32.mrb[3].mxu0 }
 0x11f   :  { %189 = vst [vmem:[#allocation8] sm:$0xff] %v187_v15  ;;  %v188_v18 = vmax.f32 %v186_v16, 0.0 }
 0x121   :  { %190 = vst [vmem:[#allocation8 + $0x8] sm:$0xff] %v188_v18 }
 0x122   :  { %321 = shalt.err (!%p318_p6)
}
 0x123   :  { %s322_s15 = scalar_lea.hbm %s409_s3, 256 }
 0x124   :  { %p323_p7 = scmp.ne.s32.totalorder %s409_s3, %s322_s15  ;;  %p326_p8 = scmp.lt.u32.totalorder %s322_s15, %s409_s3 }
 0x126   :  { %p328_p9 = pnand %p326_p8, %p323_p7 }
 0x128   :  { %331 = shalt.err (!%p328_p9)
}
 0x129   :  { %s345_s20 = smov 128   ;;  %s346_s21 = smov 8  }
 0x12a   :  { %202 = dma.vmem_to_hbm [thread:$0]  %s197_s12, 256, %s409_s3, [#allocation5], %s345_s20, %s345_s20, %s346_s21  }
 0x12b   :  { %336 = dma.done.wait [#allocation5], 256  }
 0x12c   :  { %337 = vsyncadd [#allocation5], 4294967040 }
 0x12d   :  { %206 = vsyncpa [#allocation4], 1 }
 0x12e   :  { %207 = vsyncpa [#allocation7], 1 }
 0x12f   :  { %208 = vsyncpa [#allocation5], 1 }

</bundles_post_ra>
